<compile_context>
chip_gen: v6e
topology: v6e:2x2x1
jax: 0.10.0
libtpu: 0.0.40
codegen_flags: <defaults>
</compile_context>

<pallas_src>
import functools

import jax
import jax.numpy as jnp
from jax import lax
from jax.experimental import pallas as pl
from jax.experimental.pallas import tpu as pltpu


def _sum_spatial(x):
    """Sum over the last two (sublane, lane) axes, keepdims=True."""
    return jnp.sum(jnp.sum(x, axis=-1, keepdims=True), axis=-2, keepdims=True)


def _sum_all(x):
    """Full reduction to a 0-d f32: minor axes first, then the tiny remainder."""
    x = jnp.sum(x, axis=-1, keepdims=True)
    if x.ndim >= 2:
        x = jnp.sum(x, axis=-2, keepdims=True)
    return jnp.sum(x)


def _loss_depth_deblur_kernel(pred_ref, gt_ref, part_ref, *, rows, n_chunks):
    # pred_ref / gt_ref: (b_tile, c, h, w) block — full h, w so the (8, 128)
    # vreg tile is filled by spatial pixels (dense lanes/sublanes).
    bt, c, h, w = pred_ref.shape
    hw = h * w

    def load(start):
        o = pred_ref[:, :, pl.ds(start, rows), :].astype(jnp.float32)
        g = gt_ref[:, :, pl.ds(start, rows), :].astype(jnp.float32)
        return o, g

    def chunked(body, init):
        # Strip-mine over h-row chunks to bound live f32 temporaries.
        if n_chunks == 1:
            return body(0, init)

        def wrapped(j, carry):
            start = pl.multiple_of(j * rows, rows)
            return body(start, carry)

        return lax.fori_loop(0, n_chunks, wrapped, init)

    # ---- Pass 1: per-(b, c) mean of delta --------------------------------
    def p_sum(start, acc):
        o, g = load(start)
        return acc + _sum_spatial(o - g)

    s1 = chunked(p_sum, jnp.zeros((bt, c, 1, 1), jnp.float32))
    avg = s1 * (1.0 / hw)                                   # (bt, c, 1, 1)

    # ---- Pass 2: per-(b, c) centered sum-of-squares -----------------------
    # Two-pass (centered) variant: avoids E[x^2] - E[x]^2 cancellation.
    def p_ssq(start, acc):
        o, g = load(start)
        cen = (o - g) - avg
        return acc + _sum_spatial(cen * cen)

    ssq = chunked(p_ssq, jnp.zeros((bt, c, 1, 1), jnp.float32))
    # torch .std() is the unbiased (N-1) estimator; the module divides by
    # sqrt(2).  Single EUP rsqrt replaces sqrt + approximate reciprocal.
    # NOTE: a constant-residual plane gives ssq == 0 -> inf/NaN, same hazard
    # as the PyTorch reference (no epsilon added, to preserve parity).
    inv_std = lax.rsqrt(ssq * (1.0 / (2.0 * (hw - 1))))      # (bt, c, 1, 1)

    # ---- Pass 3: OA weighted-|delta| sum + cosine (1 - cos) sum -----------
    def p_loss(start, carry):
        oa, cs = carry
        o, g = load(start)
        d = o - g
        ad = jnp.abs(d)
        e = jnp.exp(-(jnp.abs(d - avg) * inv_std))
        # |delta| * (1 - e) folded: no separate weight temporary.
        oa = oa + _sum_all(ad - ad * e)

        x1 = jnp.clip(o, 0.0, 1.0)
        # Channel reductions over axis 1: cheap VPU adds across vregs.
        w12 = jnp.sum(x1 * g, axis=1)                        # (bt, rows, w)
        w1 = jnp.sum(x1 * x1, axis=1)
        w2 = jnp.sum(g * g, axis=1)
        eps = 1e-8
        # PyTorch formula: w12 / sqrt(clamp(w1*w2, eps^2)); rsqrt stays on EUP.
        cos = w12 * lax.rsqrt(jnp.maximum(w1 * w2, eps * eps))
        cs = cs + _sum_all(1.0 - cos)
        return oa, cs

    oa_sum, cs_sum = chunked(
        p_loss,
        (jnp.zeros((1, 1), jnp.float32), jnp.zeros((1, 1), jnp.float32)),
    )

    # Lane-dense (8, 128) partial tile: [0,0] = OA sum, [0,1] = CS sum.
    sub = lax.broadcasted_iota(jnp.int32, (8, 128), 0)
    lane = lax.broadcasted_iota(jnp.int32, (8, 128), 1)
    part_ref[...] = jnp.where(
        (sub == 0) & (lane == 0),
        oa_sum,
        jnp.where((sub == 0) & (lane == 1), cs_sum, jnp.float32(0.0)),
    )


def _pick_b_tile(b, per_item_bytes, *, target=512 * 1024, io_vmem_cap=24 * 1024 * 1024):
    """Smallest divisor of b moving >= ~512 KiB/input/step, capped by VMEM."""
    best = 1
    for t in range(1, b + 1):
        if b % t:
            continue
        step_bytes = t * per_item_bytes
        if 2 * 2 * step_bytes > io_vmem_cap:      # 2 inputs x double-buffer
            break
        best = t
        if step_bytes >= target:
            break
    return best


def _pick_rows_per_chunk(h, row_bytes, budget):
    """Largest divisor of h whose f32 chunk fits `budget`; prefer multiples of 8."""
    if h * row_bytes <= budget:
        return h
    limit = max(1, budget // row_bytes)
    fallback = 1
    for ch in range(min(h, int(limit)), 0, -1):
        if h % ch == 0:
            if ch % 8 == 0:
                return ch
            if fallback == 1:
                fallback = ch
    return fallback


def loss_depth_deblur(pred, gt, *, b_tile=None, rows_per_chunk=None,
                      chunk_budget_bytes=1 << 20, vmem_limit_bytes=None):
    """pred, gt: (b, c, h, w) arrays (f32 or bf16). Returns scalar f32 loss."""
    assert pred.shape == gt.shape, (pred.shape, gt.shape)
    b, c, h, w = pred.shape
    hw = h * w
    itemsize = jnp.dtype(pred.dtype).itemsize
    per_item_bytes = c * hw * itemsize

    if b_tile is None:
        b_tile = _pick_b_tile(b, per_item_bytes)
    assert b % b_tile == 0, (b, b_tile)
    n_steps = b // b_tile

    if rows_per_chunk is None:
        rows_per_chunk = _pick_rows_per_chunk(h, b_tile * c * w * 4, chunk_budget_bytes)
    assert h % rows_per_chunk == 0, (h, rows_per_chunk)
    n_chunks = h // rows_per_chunk

    if vmem_limit_bytes is None:
        # 2 inputs x 2 pipeline buffers of the step block, plus strip-mined
        # f32 chunk temporaries (generous factor) and misc headroom.
        io_bytes = 2 * 2 * b_tile * per_item_bytes
        tmp_bytes = 12 * b_tile * c * rows_per_chunk * w * 4
        need = io_bytes + tmp_bytes + (2 << 20)
        vmem_limit_bytes = int(min(max(need, 16 << 20), 64 << 20))

    kernel = functools.partial(
        _loss_depth_deblur_kernel, rows=rows_per_chunk, n_chunks=n_chunks)

    partials = pl.pallas_call(
        kernel,
        out_shape=jax.ShapeDtypeStruct((n_steps, 8, 128), jnp.float32),
        grid=(n_steps,),
        in_specs=[
            pl.BlockSpec((b_tile, c, h, w), lambda i: (i, 0, 0, 0)),
            pl.BlockSpec((b_tile, c, h, w), lambda i: (i, 0, 0, 0)),
        ],
        out_specs=pl.BlockSpec((None, 8, 128), lambda i: (i, 0, 0)),
        compiler_params=pltpu.CompilerParams(
            dimension_semantics=("parallel",),
            vmem_limit_bytes=vmem_limit_bytes,
        ),
        cost_estimate=pl.CostEstimate(
            flops=int(20 * b * c * hw),
            transcendentals=int(b * c * hw + b * hw + b * c),
            bytes_accessed=int(2 * b * c * hw * itemsize + n_steps * 8 * 128 * 4),
        ),
    )(pred, gt)

    # Partial sums per grid step; divide once by the exact element counts.
    n_total = b * c * hw
    oa_loss = jnp.sum(partials[:, 0, 0]) / n_total     # mean over b*c*h*w
    cs_loss = jnp.sum(partials[:, 0, 1]) / (b * hw)    # mean over b*h*w
    return oa_loss + cs_loss


def _reference_loss(pred, gt):
    """Pure-JAX reference matching LossDepthDeblur.forward."""
    pred = pred.astype(jnp.float32)
    gt = gt.astype(jnp.float32)

    delta = pred - gt
    avg = jnp.mean(delta, axis=(2, 3), keepdims=True)
    var = jnp.std(delta, axis=(2, 3), keepdims=True, ddof=1) / jnp.sqrt(2.0)
    weight = 1.0 - jnp.exp(-jnp.abs(delta - avg) / var)
    oa = jnp.mean(jnp.abs(delta) * weight)

    x1 = jnp.clip(pred, 0.0, 1.0)
    w12 = jnp.sum(x1 * gt, axis=1)
    w1 = jnp.sum(x1 * x1, axis=1)
    w2 = jnp.sum(gt * gt, axis=1)
    eps = 1e-8
    cos = w12 / jnp.sqrt(jnp.maximum(w1 * w2, eps * eps))
    cs = jnp.mean(1.0 - cos)
    return oa + cs


if __name__ == "__main__":
    key = jax.random.PRNGKey(0)
    k1, k2 = jax.random.split(key)

    # Small demo (single-chunk, single-step fast path).
    b, c, h, w = 2, 4, 16, 16
    out = jax.random.normal(k1, (b, c, h, w), dtype=jnp.float32)
    gt = jax.random.normal(k2, (b, c, h, w), dtype=jnp.float32)
    loss = jax.block_until_ready(loss_depth_deblur(out, gt))
    ref = _reference_loss(out, gt)
    assert jnp.allclose(loss, ref, rtol=1e-4, atol=1e-5), (loss, ref)

    # Exercise the strip-mined (fori_loop) path and a 2-step batch grid.
    k3, k4 = jax.random.split(k1)
    out2 = jax.random.normal(k3, (2, 3, 32, 128), dtype=jnp.float32)
    gt2 = jax.random.normal(k4, (2, 3, 32, 128), dtype=jnp.float32)
    loss2 = jax.block_until_ready(
        loss_depth_deblur(out2, gt2, b_tile=1, rows_per_chunk=8))
    ref2 = _reference_loss(out2, gt2)
    assert jnp.allclose(loss2, ref2, rtol=1e-4, atol=1e-5), (loss2, ref2)

    print("KERNEL_OK")
</pallas_src>

<mosaic_0001>
module attributes {stable_mosaic.version = 11 : i64} {
  func.func @_loss_depth_deblur_kernel(%arg0: i32, %arg1: memref<2x4x16x16xf32, #tpu.memory_space<vmem>>, %arg2: memref<2x4x16x16xf32, #tpu.memory_space<vmem>>, %arg3: memref<1x8x128xf32, #tpu.memory_space<vmem>>) attributes {dimension_semantics = [#tpu.dimension_semantics<parallel>], iteration_bounds = array<i64: 1>, scalar_prefetch = 0 : i64, scratch_operands = 0 : i64, tpu.core_type = #tpu.core_type<tc>, window_params = [{transform_indices = @transform_0, window_bounds = array<i64: 2, 4, 16, 16>}, {transform_indices = @transform_1, window_bounds = array<i64: 2, 4, 16, 16>}, {transform_indices = @transform_2, window_bounds = array<i64: 1, 8, 128>}]} {
    %cst = arith.constant 0.000000e+00 : f32
    %0 = vector.broadcast %cst : f32 to vector<2x4x1x1xf32>
    %c0 = arith.constant 0 : index
    %c0_0 = arith.constant 0 : index
    %c0_1 = arith.constant 0 : index
    %c0_2 = arith.constant 0 : index
    %1 = vector.load %arg1[%c0, %c0_0, %c0_1, %c0_2] : memref<2x4x16x16xf32, #tpu.memory_space<vmem>>, vector<2x4x16x16xf32>
    %c0_3 = arith.constant 0 : index
    %c0_4 = arith.constant 0 : index
    %c0_5 = arith.constant 0 : index
    %c0_6 = arith.constant 0 : index
    %2 = vector.load %arg2[%c0_3, %c0_4, %c0_5, %c0_6] : memref<2x4x16x16xf32, #tpu.memory_space<vmem>>, vector<2x4x16x16xf32>
    %3 = arith.subf %1, %2 : vector<2x4x16x16xf32>
    %cst_7 = arith.constant dense<0.000000e+00> : vector<2x4x16xf32>
    %4 = vector.multi_reduction <add>, %3, %cst_7 [3] : vector<2x4x16x16xf32> to vector<2x4x16xf32>
    %5 = vector.shape_cast %4 : vector<2x4x16xf32> to vector<2x4x16x1xf32>
    %cst_8 = arith.constant dense<0.000000e+00> : vector<2x4x1xf32>
    %6 = vector.multi_reduction <add>, %5, %cst_8 [2] : vector<2x4x16x1xf32> to vector<2x4x1xf32>
    %7 = vector.shape_cast %6 : vector<2x4x1xf32> to vector<2x4x1x1xf32>
    %8 = arith.addf %0, %7 : vector<2x4x1x1xf32>
    %cst_9 = arith.constant 3.906250e-03 : f32
    %9 = vector.broadcast %cst_9 : f32 to vector<2x4x1x1xf32>
    %10 = arith.mulf %8, %9 : vector<2x4x1x1xf32>
    %cst_10 = arith.constant 0.000000e+00 : f32
    %11 = vector.broadcast %cst_10 : f32 to vector<2x4x1x1xf32>
    %c0_11 = arith.constant 0 : index
    %c0_12 = arith.constant 0 : index
    %c0_13 = arith.constant 0 : index
    %c0_14 = arith.constant 0 : index
    %12 = vector.load %arg1[%c0_11, %c0_12, %c0_13, %c0_14] : memref<2x4x16x16xf32, #tpu.memory_space<vmem>>, vector<2x4x16x16xf32>
    %c0_15 = arith.constant 0 : index
    %c0_16 = arith.constant 0 : index
    %c0_17 = arith.constant 0 : index
    %c0_18 = arith.constant 0 : index
    %13 = vector.load %arg2[%c0_15, %c0_16, %c0_17, %c0_18] : memref<2x4x16x16xf32, #tpu.memory_space<vmem>>, vector<2x4x16x16xf32>
    %14 = arith.subf %12, %13 : vector<2x4x16x16xf32>
    %15 = vector.broadcast %10 : vector<2x4x1x1xf32> to vector<2x4x16x16xf32>
    %16 = arith.subf %14, %15 : vector<2x4x16x16xf32>
    %17 = arith.mulf %16, %16 : vector<2x4x16x16xf32>
    %cst_19 = arith.constant dense<0.000000e+00> : vector<2x4x16xf32>
    %18 = vector.multi_reduction <add>, %17, %cst_19 [3] : vector<2x4x16x16xf32> to vector<2x4x16xf32>
    %19 = vector.shape_cast %18 : vector<2x4x16xf32> to vector<2x4x16x1xf32>
    %cst_20 = arith.constant dense<0.000000e+00> : vector<2x4x1xf32>
    %20 = vector.multi_reduction <add>, %19, %cst_20 [2] : vector<2x4x16x1xf32> to vector<2x4x1xf32>
    %21 = vector.shape_cast %20 : vector<2x4x1xf32> to vector<2x4x1x1xf32>
    %22 = arith.addf %11, %21 : vector<2x4x1x1xf32>
    %cst_21 = arith.constant 0.00196078443 : f32
    %23 = vector.broadcast %cst_21 : f32 to vector<2x4x1x1xf32>
    %24 = arith.mulf %22, %23 : vector<2x4x1x1xf32>
    %25 = math.rsqrt %24 : vector<2x4x1x1xf32>
    %cst_22 = arith.constant 0.000000e+00 : f32
    %26 = vector.broadcast %cst_22 : f32 to vector<1x1xf32>
    %cst_23 = arith.constant 0.000000e+00 : f32
    %27 = vector.broadcast %cst_23 : f32 to vector<1x1xf32>
    %c0_24 = arith.constant 0 : index
    %c0_25 = arith.constant 0 : index
    %c0_26 = arith.constant 0 : index
    %c0_27 = arith.constant 0 : index
    %28 = vector.load %arg1[%c0_24, %c0_25, %c0_26, %c0_27] : memref<2x4x16x16xf32, #tpu.memory_space<vmem>>, vector<2x4x16x16xf32>
    %c0_28 = arith.constant 0 : index
    %c0_29 = arith.constant 0 : index
    %c0_30 = arith.constant 0 : index
    %c0_31 = arith.constant 0 : index
    %29 = vector.load %arg2[%c0_28, %c0_29, %c0_30, %c0_31] : memref<2x4x16x16xf32, #tpu.memory_space<vmem>>, vector<2x4x16x16xf32>
    %30 = arith.subf %28, %29 : vector<2x4x16x16xf32>
    %31 = math.absf %30 : vector<2x4x16x16xf32>
    %32 = vector.broadcast %10 : vector<2x4x1x1xf32> to vector<2x4x16x16xf32>
    %33 = arith.subf %30, %32 : vector<2x4x16x16xf32>
    %34 = math.absf %33 : vector<2x4x16x16xf32>
    %35 = vector.broadcast %25 : vector<2x4x1x1xf32> to vector<2x4x16x16xf32>
    %36 = arith.mulf %34, %35 : vector<2x4x16x16xf32>
    %cst_32 = arith.constant 0.000000e+00 : f32
    %37 = vector.broadcast %cst_32 : f32 to vector<2x4x16x16xf32>
    %38 = arith.subf %37, %36 : vector<2x4x16x16xf32>
    %39 = math.exp %38 : vector<2x4x16x16xf32>
    %40 = arith.mulf %31, %39 : vector<2x4x16x16xf32>
    %41 = arith.subf %31, %40 : vector<2x4x16x16xf32>
    %cst_33 = arith.constant dense<0.000000e+00> : vector<2x4x16xf32>
    %42 = vector.multi_reduction <add>, %41, %cst_33 [3] : vector<2x4x16x16xf32> to vector<2x4x16xf32>
    %43 = vector.shape_cast %42 : vector<2x4x16xf32> to vector<2x4x16x1xf32>
    %cst_34 = arith.constant dense<0.000000e+00> : vector<2x4x1xf32>
    %44 = vector.multi_reduction <add>, %43, %cst_34 [2] : vector<2x4x16x1xf32> to vector<2x4x1xf32>
    %45 = vector.shape_cast %44 : vector<2x4x1xf32> to vector<2x4x1x1xf32>
    %46 = vector.shape_cast %45 : vector<2x4x1x1xf32> to vector<1x2x4x1x1xf32>
    %cst_35 = arith.constant dense<0.000000e+00> : vector<1xf32>
    %47 = vector.multi_reduction <add>, %46, %cst_35 [1, 2, 3, 4] : vector<1x2x4x1x1xf32> to vector<1xf32>
    %48 = vector.shape_cast %47 : vector<1xf32> to vector<1x1x1x1x1xf32>
    %49 = vector.extract %48[0, 0, 0, 0, 0] : f32 from vector<1x1x1x1x1xf32>
    %50 = vector.broadcast %49 : f32 to vector<1x1xf32>
    %51 = arith.addf %26, %50 : vector<1x1xf32>
    %cst_36 = arith.constant 0.000000e+00 : f32
    %cst_37 = arith.constant 1.000000e+00 : f32
    %52 = vector.broadcast %cst_36 : f32 to vector<2x4x16x16xf32>
    %53 = arith.maximumf %52, %28 : vector<2x4x16x16xf32>
    %54 = vector.broadcast %cst_37 : f32 to vector<2x4x16x16xf32>
    %55 = arith.minimumf %54, %53 : vector<2x4x16x16xf32>
    %56 = arith.mulf %55, %29 : vector<2x4x16x16xf32>
    %cst_38 = arith.constant dense<0.000000e+00> : vector<2x16x16xf32>
    %57 = vector.multi_reduction <add>, %56, %cst_38 [1] : vector<2x4x16x16xf32> to vector<2x16x16xf32>
    %58 = arith.mulf %55, %55 : vector<2x4x16x16xf32>
    %cst_39 = arith.constant dense<0.000000e+00> : vector<2x16x16xf32>
    %59 = vector.multi_reduction <add>, %58, %cst_39 [1] : vector<2x4x16x16xf32> to vector<2x16x16xf32>
    %60 = arith.mulf %29, %29 : vector<2x4x16x16xf32>
    %cst_40 = arith.constant dense<0.000000e+00> : vector<2x16x16xf32>
    %61 = vector.multi_reduction <add>, %60, %cst_40 [1] : vector<2x4x16x16xf32> to vector<2x16x16xf32>
    %62 = arith.mulf %59, %61 : vector<2x16x16xf32>
    %cst_41 = arith.constant 1.000000e-16 : f32
    %63 = vector.broadcast %cst_41 : f32 to vector<2x16x16xf32>
    %64 = arith.maximumf %62, %63 : vector<2x16x16xf32>
    %65 = math.rsqrt %64 : vector<2x16x16xf32>
    %66 = arith.mulf %57, %65 : vector<2x16x16xf32>
    %cst_42 = arith.constant 1.000000e+00 : f32
    %67 = vector.broadcast %cst_42 : f32 to vector<2x16x16xf32>
    %68 = arith.subf %67, %66 : vector<2x16x16xf32>
    %cst_43 = arith.constant dense<0.000000e+00> : vector<2x16xf32>
    %69 = vector.multi_reduction <add>, %68, %cst_43 [2] : vector<2x16x16xf32> to vector<2x16xf32>
    %70 = vector.shape_cast %69 : vector<2x16xf32> to vector<2x16x1xf32>
    %cst_44 = arith.constant dense<0.000000e+00> : vector<2x1xf32>
    %71 = vector.multi_reduction <add>, %70, %cst_44 [1] : vector<2x16x1xf32> to vector<2x1xf32>
    %72 = vector.shape_cast %71 : vector<2x1xf32> to vector<2x1x1xf32>
    %73 = vector.shape_cast %72 : vector<2x1x1xf32> to vector<1x2x1x1xf32>
    %cst_45 = arith.constant dense<0.000000e+00> : vector<1xf32>
    %74 = vector.multi_reduction <add>, %73, %cst_45 [1, 2, 3] : vector<1x2x1x1xf32> to vector<1xf32>
    %75 = vector.shape_cast %74 : vector<1xf32> to vector<1x1x1x1xf32>
    %76 = vector.extract %75[0, 0, 0, 0] : f32 from vector<1x1x1x1xf32>
    %77 = vector.broadcast %76 : f32 to vector<1x1xf32>
    %78 = arith.addf %27, %77 : vector<1x1xf32>
    %79 = tpu.iota {dimensions = array<i32: 0>} : vector<8x128xi32>
    %80 = tpu.iota {dimensions = array<i32: 1>} : vector<8x128xi32>
    %c0_i32 = arith.constant 0 : i32
    %81 = vector.broadcast %c0_i32 : i32 to vector<8x128xi32>
    %82 = arith.cmpi eq, %79, %81 : vector<8x128xi32>
    %c0_i32_46 = arith.constant 0 : i32
    %83 = vector.broadcast %c0_i32_46 : i32 to vector<8x128xi32>
    %84 = arith.cmpi eq, %80, %83 : vector<8x128xi32>
    %85 = arith.andi %82, %84 : vector<8x128xi1>
    %c0_i32_47 = arith.constant 0 : i32
    %86 = vector.broadcast %c0_i32_47 : i32 to vector<8x128xi32>
    %87 = arith.cmpi eq, %79, %86 : vector<8x128xi32>
    %c1_i32 = arith.constant 1 : i32
    %88 = vector.broadcast %c1_i32 : i32 to vector<8x128xi32>
    %89 = arith.cmpi eq, %80, %88 : vector<8x128xi32>
    %90 = arith.andi %87, %89 : vector<8x128xi1>
    %cst_48 = arith.constant 0.000000e+00 : f32
    %91 = vector.shape_cast %78 : vector<1x1xf32> to vector<1x1xf32>
    %92 = vector.broadcast %91 : vector<1x1xf32> to vector<8x128xf32>
    %93 = vector.broadcast %cst_48 : f32 to vector<8x128xf32>
    %94 = arith.select %90, %92, %93 : vector<8x128xi1>, vector<8x128xf32>
    %95 = vector.shape_cast %51 : vector<1x1xf32> to vector<1x1xf32>
    %96 = vector.broadcast %95 : vector<1x1xf32> to vector<8x128xf32>
    %97 = arith.select %85, %96, %94 : vector<8x128xi1>, vector<8x128xf32>
    %c0_49 = arith.constant 0 : index
    %c0_50 = arith.constant 0 : index
    %c0_51 = arith.constant 0 : index
    %98 = vector.load %arg3[%c0_49, %c0_50, %c0_51] : memref<1x8x128xf32, #tpu.memory_space<vmem>>, vector<1x8x128xf32>
    %99 = vector.shape_cast %98 : vector<1x8x128xf32> to vector<8x128xf32>
    %100 = vector.shape_cast %97 : vector<8x128xf32> to vector<1x8x128xf32>
    tpu.vector_store %arg3[%c0_49, %c0_50, %c0_51], %100 {strides = array<i32>} : memref<1x8x128xf32, #tpu.memory_space<vmem>>, vector<1x8x128xf32>,
    return
  }
  func.func @transform_0(%arg0: i32) -> (i32, i32, i32, i32) {
    %c0_i32 = arith.constant 0 : i32
    %c0_i32_0 = arith.constant 0 : i32
    %c0_i32_1 = arith.constant 0 : i32
    %c0_i32_2 = arith.constant 0 : i32
    return %arg0, %c0_i32, %c0_i32_0, %c0_i32_1 : i32, i32, i32, i32
  }
  func.func @transform_1(%arg0: i32) -> (i32, i32, i32, i32) {
    %c0_i32 = arith.constant 0 : i32
    %c0_i32_0 = arith.constant 0 : i32
    %c0_i32_1 = arith.constant 0 : i32
    %c0_i32_2 = arith.constant 0 : i32
    return %arg0, %c0_i32, %c0_i32_0, %c0_i32_1 : i32, i32, i32, i32
  }
  func.func @transform_2(%arg0: i32) -> (i32, i32, i32) {
    %c0_i32 = arith.constant 0 : i32
    %c0_i32_0 = arith.constant 0 : i32
    %c0_i32_1 = arith.constant 0 : i32
    return %arg0, %c0_i32, %c0_i32_0 : i32, i32, i32
  }
}

</mosaic_0001>

<bundles_post_ra>
// kernel: tpu_custom_call.1
= control target key start
LH: loop header
LB: loop body
LE: loop exit
PB: predicated region body
PF: predicated region fallthrough
CT: control target
= control target key end

     0   :  { %7 = vsyncpa [#allocation3], 0  ;;  %s1408_s0 = inlined_call_operand.hbm [shape: f32[2,4,16,16], index: 0, kind: input, shape index: {}]   ;;  %s1409_s1 = inlined_call_operand.hbm [shape: f32[2,4,16,16], index: 1, kind: input, shape index: {}]   ;;  %s1410_s2 = inlined_call_operand.hbm [shape: f32[1,8,128], index: 2, kind: output, shape index: {}]  }
   0x1   :  { %8 = vsyncpa [#allocation6], 0 }
   0x2   :  { %9 = vsyncpa [#allocation4], 0  ;;  %s1011_s9 = smov [#allocation2]  }
   0x3   :  { %s15_s10 = sshll.u32 %s1011_s9, 4  ;;  %s16_s10 = int_to_ptr.vmem [resolvable:$true] %s15_s10 }
   0x4   :  { %s953_s11 = scalar_lea.vmem %s16_s10, 2048  ;;  %p958_p1 = scmp.lt.s32.totalorder %s16_s10, %s16_s10 }
   0x5   :  { %p954_p0 = scmp.ne.s32.totalorder %s16_s10, %s953_s11  ;;  %p959_p2 = scmp.lt.s32.totalorder %s953_s11, %s953_s11 }
   0x7   :  { %p960_p3 = por %p959_p2, %p958_p1 }
   0x9   :  { %p961_p4 = pnand %p960_p3, %p954_p0 }
   0xb   :  { %964 = shalt.err (!%p961_p4)
}
   0xc   :  { %s1012_s12 = smov 128   ;;  %s1013_s13 = smov 8  }
   0xd   :  { %21 = dma.hbm_to_vmem [thread:$0]  %s1408_s0, 2048, %s16_s10, [#allocation3], %s1012_s12, %s1012_s12, %s1013_s13  }
   0xe   :  { %s1014_s16 = smov [#allocation5]  }
   0xf   :  { %s27_s17 = sshll.u32 %s1014_s16, 4  ;;  %s28_s17 = int_to_ptr.vmem [resolvable:$true] %s27_s17 }
  0x10   :  { %s973_s18 = scalar_lea.vmem %s28_s17, 2048  ;;  %p978_p6 = scmp.lt.s32.totalorder %s28_s17, %s28_s17 }
  0x11   :  { %p974_p5 = scmp.ne.s32.totalorder %s28_s17, %s973_s18  ;;  %p979_p7 = scmp.lt.s32.totalorder %s973_s18, %s973_s18 }
  0x13   :  { %p980_p8 = por %p979_p7, %p978_p6 }
  0x15   :  { %p981_p9 = pnand %p980_p8, %p974_p5 }
  0x17   :  { %984 = shalt.err (!%p981_p9)
}
  0x18   :  { %33 = dma.hbm_to_vmem [thread:$0]  %s1409_s1, 2048, %s28_s17, [#allocation6], %s1012_s12, %s1012_s12, %s1013_s13  }
  0x19   :  { %1005 = dma.done.wait [#allocation3], 2048  }
  0x1a   :  { %1006 = vsyncadd [#allocation3], 4294965248 }
  0x1b   :  { %1007 = dma.done.wait [#allocation6], 2048  }
  0x1c   :  { %1008 = vsyncadd [#allocation6], 4294965248  ;;  %v42_v0 = vld [vmem:[#allocation2 + $0x10] sm:$0xff]  ;;  %vm88_vm0 = vcmask 130048   ;;  %v40_v2 = vld [vmem:[#allocation2] sm:$0xff]  ;;  %vm601_vm1 = vcmask 0  }
  0x1d   :  { %v58_v1 = vld [vmem:[#allocation5 + $0x10] sm:$0xff]  ;;  %v630_v4 = vmax.f32 %v42_v0, 0.0  ;;  %v56_v6 = vld [vmem:[#allocation5] sm:$0xff]  ;;  %v628_v7 = vmax.f32 %v40_v2, 0.0  ;;  %v43_v8 = vld [vmem:[#allocation2 + $0x18] sm:$0xff]  ;;  %s1015_s1 = smov [#allocation7]  }
  0x1e   :  { %v1037_v3 = vsub.f32 %v42_v0, %v58_v1  ;;  %v750_v5 = vmul.f32 %v58_v1, %v58_v1  ;;  %v59_v9 = vld [vmem:[#allocation5 + $0x18] sm:$0xff]  ;;  %v1039_v10 = vsub.f32 %v40_v2, %v56_v6  ;;  %v748_v11 = vmul.f32 %v56_v6, %v56_v6  ;;  %v41_v22 = vld [vmem:[#allocation2 + $0x8] sm:$0xff]  ;;  %v44_v38 = vld [vmem:[#allocation2 + $0x20] sm:$0xff]  ;;  %s870_s21 = sshll.u32 %s1015_s1, 4  ;;  %s871_s21 = int_to_ptr.vmem [resolvable:$true] %s870_s21 }
  0x1f   :  { %v1041_v12 = vsub.f32 %v43_v8, %v59_v9  ;;  %v631_v13 = vmax.f32 %v43_v8, 0.0  ;;  %v646_v15 = vmin.f32 %v630_v4, 1.0  ;;  %v644_v17 = vmin.f32 %v628_v7, 1.0  ;;  %v57_v23 = vld [vmem:[#allocation5 + $0x8] sm:$0xff]  ;;  %v60_v39 = vld [vmem:[#allocation5 + $0x20] sm:$0xff]  ;;  %v47_v52 = vld [vmem:[#allocation2 + $0x38] sm:$0xff]  ;;  %p990_p11 = scmp.lt.s32.totalorder %s871_s21, %s871_s21 }
  0x20   :  { %1416 = vst [vmem:[#allocation11_spill] sm:$0xff] %v1037_v3  ;;  %v95_v14 = vsel %vm88_vm0, %v1037_v3, 0.0  ;;  %v765_v16 = vsel %vm88_vm0, %v750_v5, 0.0  ;;  %v89_v18 = vsel %vm88_vm0, %v1039_v10, 0.0  ;;  %v764_v19 = vsel %vm88_vm0, %v748_v11, 0.0  ;;  %v45_v32 = vld [vmem:[#allocation2 + $0x28] sm:$0xff] }
  0x21   :  { %96 = vadd.xlane.f32.xlu1 %v95_v14  ;;  %v98_v20 = vsel %vm88_vm0, %v1041_v12, 0.0  ;;  %v647_v21 = vmin.f32 %v631_v13, 1.0  ;;  %v1051_v24 = vmul.f32 %v646_v15, %v58_v1  ;;  %v706_v25 = vmul.f32 %v646_v15, %v646_v15  ;;  %90 = vadd.xlane.f32.xlu0 %v89_v18  ;;  %v61_v33 = vld [vmem:[#allocation5 + $0x28] sm:$0xff]  ;;  %v1070_v53 = vld [vmem:[#allocation5 + $0x38] sm:$0xff]  ;;  %v46_v2 = vld [vmem:[#allocation2 + $0x30] sm:$0xff]  ;;  %s985_s23 = scalar_lea.vmem %s871_s21, 128 }
  0x22   :  { %v1053_v26 = vmul.f32 %v644_v17, %v56_v6  ;;  %v704_v27 = vmul.f32 %v644_v17, %v644_v17  ;;  %v766_v28 = vadd.f32 %v765_v16, %v764_v19  ;;  %v751_v31 = vmul.f32 %v59_v9, %v59_v9  ;;  %v1083_v4 = vld [vmem:[#allocation5 + $0x30] sm:$0xff]  ;;  %v49_v19 = vld [vmem:[#allocation2 + $0x48] sm:$0xff]  ;;  %p986_p10 = scmp.ne.s32.totalorder %s871_s21, %s985_s23  ;;  %p991_p12 = scmp.lt.s32.totalorder %s985_s23, %s985_s23 }
  0x23   :  { %v1055_v29 = vmul.f32 %v647_v21, %v59_v9  ;;  %v707_v30 = vmul.f32 %v647_v21, %v647_v21  ;;  %v721_v34 = vsel %vm88_vm0, %v706_v25, 0.0  ;;  %v1059_v36 = vsub.f32 %v41_v22, %v57_v23 }
  0x24   :  { %v720_v35 = vsel %vm88_vm0, %v704_v27, 0.0  ;;  %v629_v37 = vmax.f32 %v41_v22, 0.0  ;;  %v772_v42 = vsel %vm88_vm0, %v751_v31, 0.0  ;;  %v749_v43 = vmul.f32 %v57_v23, %v57_v23  ;;  %v48_v27 = vld [vmem:[#allocation2 + $0x40] sm:$0xff]  ;;  %p992_p13 = por %p991_p12, %p990_p11 }
  0x25   :  { %v722_v40 = vadd.f32 %v721_v34, %v720_v35  ;;  %v728_v41 = vsel %vm88_vm0, %v707_v30, 0.0  ;;  %99 = vadd.xlane.f32.xlu1 %v98_v20  ;;  %v92_v44 = vsel %vm88_vm0, %v1059_v36, 0.0  ;;  %v1065_v46 = vsub.f32 %v45_v32, %v61_v33  ;;  %v65_v20 = vld [vmem:[#allocation5 + $0x48] sm:$0xff]  ;;  %v64_v30 = vld [vmem:[#allocation5 + $0x40] sm:$0xff] }
  0x26   :  { %v645_v45 = vmin.f32 %v629_v37, 1.0  ;;  %v633_v47 = vmax.f32 %v45_v32, 0.0  ;;  %v771_v48 = vsel %vm88_vm0, %v749_v43, 0.0  ;;  %93 = vadd.xlane.f32.xlu0 %v92_v44  ;;  %v753_v49 = vmul.f32 %v61_v33, %v61_v33  ;;  %v67_v43 = vld [vmem:[#allocation5 + $0x58] sm:$0xff]  ;;  %p993_p0 = pnand %p992_p13, %p986_p10 }
  0x27   :  { %v1068_v50 = vsub.f32 %v44_v38, %v60_v39  ;;  %v632_v51 = vmax.f32 %v44_v38, 0.0  ;;  %v773_v56 = vadd.f32 %v772_v42, %v771_v48  ;;  %v104_v57 = vsel %vm88_vm0, %v1065_v46, 0.0  ;;  %v51_v42 = vld [vmem:[#allocation2 + $0x58] sm:$0xff] }
  0x28   :  { %v1072_v54 = vmul.f32 %v645_v45, %v57_v23  ;;  %v705_v55 = vmul.f32 %v645_v45, %v645_v45  ;;  %v649_v58 = vmin.f32 %v633_v47, 1.0  ;;  %v774_v59 = vsel %vm88_vm0, %v753_v49, 0.0 }
  0x29   :  { %105 = vadd.xlane.f32.xlu1 %v104_v57  ;;  %v101_v60 = vsel %vm88_vm0, %v1068_v50, 0.0  ;;  %v648_v61 = vmin.f32 %v632_v51, 1.0  ;;  %v775_v63 = vadd.f32 %v774_v59, %v773_v56  ;;  %v752_v0 = vmul.f32 %v60_v39, %v60_v39 }
  0x2a   :  { %v727_v62 = vsel %vm88_vm0, %v705_v55, 0.0  ;;  %v1081_v1 = vsub.f32 %v47_v52, %v1070_v53  ;;  %v1085_v6 = vmul.f32 %v649_v58, %v61_v33  ;;  %v709_v7 = vmul.f32 %v649_v58, %v649_v58  ;;  %102 = vadd.xlane.f32.xlu0 %v101_v60 }
  0x2b   :  { %v729_v5 = vadd.f32 %v728_v41, %v727_v62  ;;  %v1087_v8 = vmul.f32 %v648_v61, %v60_v39  ;;  %v708_v9 = vmul.f32 %v648_v61, %v648_v61  ;;  %v767_v11 = vsel %vm88_vm0, %v752_v0, 0.0  ;;  %v66_v0 = vld [vmem:[#allocation5 + $0x50] sm:$0xff] }
  0x2c   :  { %v110_v13 = vsel %vm88_vm0, %v1081_v1, 0.0  ;;  %v635_v14 = vmax.f32 %v47_v52, 0.0  ;;  %v730_v15 = vsel %vm88_vm0, %v709_v7, 0.0  ;;  %v768_v16 = vadd.f32 %v767_v11, %v766_v28 }
  0x2d   :  { %v755_v17 = vmul.f32 %v1070_v53, %v1070_v53  ;;  %111 = vadd.xlane.f32.xlu1 %v110_v13  ;;  %v1096_v18 = vsub.f32 %v46_v2, %v1083_v4  ;;  %v731_v21 = vadd.f32 %v730_v15, %v729_v5  ;;  %v723_v22 = vsel %vm88_vm0, %v708_v9, 0.0 }
  0x2e   :  { %v1099_v23 = vmin.f32 %v635_v14, 1.0  ;;  %v634_v25 = vmax.f32 %v46_v2, 0.0  ;;  %v724_v31 = vadd.f32 %v723_v22, %v722_v40  ;;  %v754_v33 = vmul.f32 %v1083_v4, %v1083_v4 }
  0x2f   :  { %1417 = vst [vmem:[#allocation12_spill] sm:$0xff] %v1096_v18  ;;  %v776_v28 = vsel %vm88_vm0, %v755_v17, 0.0  ;;  %v107_v32 = vsel %vm88_vm0, %v1096_v18, 0.0  ;;  %v1110_v37 = vsub.f32 %v49_v19, %v65_v20  ;;  %v637_v40 = vmax.f32 %v49_v19, 0.0 }
  0x30   :  { %v711_v34 = vmul.f32 %v1099_v23, %v1099_v23  ;;  %v1108_v35 = vmin.f32 %v634_v25, 1.0  ;;  %108 = vadd.xlane.f32.xlu0 %v107_v32  ;;  %v777_v38 = vadd.f32 %v776_v28, %v775_v63  ;;  %v769_v39 = vsel %vm88_vm0, %v754_v33, 0.0  ;;  %v50_v63 = vld [vmem:[#allocation2 + $0x50] sm:$0xff]  ;;  %v53_v25 = vld [vmem:[#allocation2 + $0x68] sm:$0xff] }
  0x31   :  { %1418 = vst [vmem:[#allocation13_spill] sm:$0xff] %v1110_v37  ;;  %v1113_v41 = vsub.f32 %v48_v27, %v64_v30  ;;  %v116_v47 = vsel %vm88_vm0, %v1110_v37, 0.0  ;;  %v757_v48 = vmul.f32 %v65_v20, %v65_v20  ;;  %v770_v51 = vadd.f32 %v769_v39, %v768_v16 }
  0x32   :  { %v732_v44 = vsel %vm88_vm0, %v711_v34, 0.0  ;;  %v710_v45 = vmul.f32 %v1108_v35, %v1108_v35  ;;  %v653_v52 = vmin.f32 %v637_v40, 1.0  ;;  %117 = vadd.xlane.f32.xlu1 %v116_v47  ;;  %v636_v57 = vmax.f32 %v48_v27, 0.0  ;;  %v69_v27 = vld [vmem:[#allocation5 + $0x68] sm:$0xff]  ;;  %v52_v47 = vld [vmem:[#allocation2 + $0x60] sm:$0xff] }
  0x33   :  { %1419 = vst [vmem:[#allocation14_spill] sm:$0xff] %v1113_v41  ;;  %v733_v49 = vadd.f32 %v732_v44, %v731_v21  ;;  %v113_v55 = vsel %vm88_vm0, %v1113_v41, 0.0  ;;  %v1123_v58 = vsub.f32 %v51_v42, %v67_v43  ;;  %v756_v62 = vmul.f32 %v64_v30, %v64_v30 }
  0x34   :  { %v725_v56 = vsel %vm88_vm0, %v710_v45, 0.0  ;;  %114 = vadd.xlane.f32.xlu0 %v113_v55  ;;  %v1127_v61 = vmul.f32 %v653_v52, %v65_v20  ;;  %v713_v2 = vmul.f32 %v653_v52, %v653_v52  ;;  %v652_v5 = vmin.f32 %v636_v57, 1.0 }
  0x35   :  { %v1125_v59 = vmul.f32 %v777_v38, %v733_v49  ;;  %v726_v60 = vadd.f32 %v725_v56, %v724_v31  ;;  %v122_v7 = vsel %vm88_vm0, %v1123_v58, 0.0  ;;  %v639_v9 = vmax.f32 %v51_v42, 0.0 }
  0x36   :  { %v785_v13 = vsel %vm88_vm0, %v757_v48, 0.0  ;;  %v759_v14 = vmul.f32 %v67_v43, %v67_v43  ;;  %123 = vadd.xlane.f32.xlu1 %v122_v7  ;;  %v1134_v15 = vmul.f32 %v652_v5, %v64_v30  ;;  %v712_v16 = vmul.f32 %v652_v5, %v652_v5  ;;  %v68_v48 = vld [vmem:[#allocation5 + $0x60] sm:$0xff] }
  0x37   :  { %v1131_v11 = vmul.f32 %v770_v51, %v726_v60  ;;  %v655_v17 = vmin.f32 %v639_v9, 1.0  ;;  %v1136_v19 = vsub.f32 %v50_v63, %v66_v0  ;;  %v778_v20 = vsel %vm88_vm0, %v756_v62, 0.0  ;;  %v55_v62 = vld [vmem:[#allocation2 + $0x78] sm:$0xff]  ;;  %v54_v9 = vld [vmem:[#allocation2 + $0x70] sm:$0xff] }
  0x38   :  { %v786_v21 = vsel %vm88_vm0, %v759_v14, 0.0  ;;  %v638_v22 = vmax.f32 %v50_v63, 0.0  ;;  %v741_v31 = vsel %vm88_vm0, %v713_v2, 0.0  ;;  %v734_v30 = vsel %vm88_vm0, %v712_v16, 0.0  ;;  %v1155_v63 = vld [vmem:[#allocation5 + $0x78] sm:$0xff] }
  0x39   :  { %v1141_v28 = vmul.f32 %v655_v17, %v67_v43  ;;  %v715_v32 = vmul.f32 %v655_v17, %v655_v17  ;;  %v787_v33 = vadd.f32 %v786_v21, %v785_v13  ;;  %v119_v34 = vsel %vm88_vm0, %v1136_v19, 0.0  ;;  %v1160_v13 = vld [vmem:[#allocation5 + $0x70] sm:$0xff] }
  0x3a   :  { %v654_v38 = vmin.f32 %v638_v22, 1.0  ;;  %v758_v39 = vmul.f32 %v66_v0, %v66_v0  ;;  %120 = vadd.xlane.f32.xlu0 %v119_v34  ;;  %v1147_v42 = vsub.f32 %v53_v25, %v69_v27  ;;  %v641_v44 = vmax.f32 %v53_v25, 0.0 }
  0x3b   :  { %v742_v40 = vsel %vm88_vm0, %v715_v32, 0.0  ;;  %v761_v45 = vmul.f32 %v69_v27, %v69_v27  ;;  %v1158_v7 = vsub.f32 %v52_v47, %v68_v48  ;;  %v1167_v25 = vsub.f32 %v55_v62, %v1155_v63 }
  0x3c   :  { %v743_v43 = vadd.f32 %v742_v40, %v741_v31  ;;  %v1149_v49 = vmul.f32 %v654_v38, %v66_v0  ;;  %v714_v51 = vmul.f32 %v654_v38, %v654_v38  ;;  %v779_v52 = vsel %vm88_vm0, %v758_v39, 0.0 }
  0x3d   :  { %v780_v55 = vadd.f32 %v779_v52, %v778_v20  ;;  %v128_v56 = vsel %vm88_vm0, %v1147_v42, 0.0  ;;  %v657_v57 = vmin.f32 %v641_v44, 1.0  ;;  %v788_v60 = vsel %vm88_vm0, %v761_v45, 0.0 }
  0x3e   :  { %v735_v2 = vsel %vm88_vm0, %v714_v51, 0.0  ;;  %v789_v5 = vadd.f32 %v788_v60, %v787_v33  ;;  %129 = vadd.xlane.f32.xlu1 %v128_v56  ;;  %v640_v0 = vmax.f32 %v52_v47, 0.0  ;;  %v760_v20 = vmul.f32 %v68_v48, %v68_v48 }
  0x3f   :  { %v736_v14 = vadd.f32 %v735_v2, %v734_v30  ;;  %v1162_v16 = vmul.f32 %v657_v57, %v69_v27  ;;  %v717_v17 = vmul.f32 %v657_v57, %v657_v57  ;;  %v125_v21 = vsel %vm88_vm0, %v1158_v7, 0.0 }
  0x40   :  { %v656_v22 = vmin.f32 %v640_v0, 1.0  ;;  %v643_v31 = vmax.f32 %v55_v62, 0.0  ;;  %v781_v33 = vsel %vm88_vm0, %v760_v20, 0.0  ;;  %126 = vadd.xlane.f32.xlu0 %v125_v21  ;;  %v763_v30 = vmul.f32 %v1155_v63, %v1155_v63 }
  0x41   :  { %v744_v32 = vsel %vm88_vm0, %v717_v17, 0.0  ;;  %v1174_v27 = vsub.f32 %v54_v9, %v1160_v13  ;;  %v782_v40 = vadd.f32 %v781_v33, %v780_v55  ;;  %v134_v44 = vsel %vm88_vm0, %v1167_v25, 0.0 }
  0x42   :  { %v745_v34 = vadd.f32 %v744_v32, %v743_v43  ;;  %v1176_v38 = vmul.f32 %v656_v22, %v68_v48  ;;  %v716_v39 = vmul.f32 %v656_v22, %v656_v22  ;;  %v1180_v45 = vmin.f32 %v643_v31, 1.0  ;;  %135 = vadd.xlane.f32.xlu1 %v134_v44 }
  0x43   :  { %v790_v47 = vsel %vm88_vm0, %v763_v30, 0.0  ;;  %v131_v51 = vsel %vm88_vm0, %v1174_v27, 0.0  ;;  %v642_v56 = vmax.f32 %v54_v9, 0.0  ;;  %v762_v48 = vmul.f32 %v1160_v13, %v1160_v13 }
  0x44   :  { %1420 = vst [vmem:[#allocation15_spill] sm:$0xff] %v1176_v38  ;;  %v737_v52 = vsel %vm88_vm0, %v716_v39, 0.0  ;;  %v719_v55 = vmul.f32 %v1180_v45, %v1180_v45  ;;  %132 = vadd.xlane.f32.xlu0 %v131_v51  ;;  %v791_v57 = vadd.f32 %v790_v47, %v789_v5 }
  0x45   :  { %v738_v43 = vadd.f32 %v737_v52, %v736_v14  ;;  %v1190_v60 = vmin.f32 %v642_v56, 1.0  ;;  %v783_v62 = vsel %vm88_vm0, %v762_v48, 0.0 }
  0x46   :  { %v746_v2 = vsel %vm88_vm0, %v719_v55, 0.0  ;;  %v784_v9 = vadd.f32 %v783_v62, %v782_v40 }
  0x47   :  { %1421 = vst [vmem:[#allocation16_spill] sm:$0xff] %v1190_v60  ;;  %v747_v0 = vadd.f32 %v746_v2, %v745_v34  ;;  %v718_v17 = vmul.f32 %v1190_v60, %v1190_v60 }
  0x49   :  { %v1196_v20 = vmul.f32 %v791_v57, %v747_v0  ;;  %v739_v14 = vsel %vm88_vm0, %v718_v17, 0.0 }
  0x4a   :  { %v740_v21 = vadd.f32 %v739_v14, %v738_v43 }
  0x4c   :  { %v1199_v22 = vmul.f32 %v784_v9, %v740_v21 }
  0xaa   :  { %v97_v31 = vpop.xlane.xlu1 %96  ;;  %v91_v5 = vpop.xlane.xlu0 %90 }
  0xae   :  { %v100_v32 = vpop.xlane.xlu1 %99 }
  0xaf   :  { %v144_v33 = vadd.f32 %v100_v32, %v97_v31  ;;  %v94_v30 = vpop.xlane.xlu0 %93 }
  0xb0   :  { %v137_v44 = vadd.f32 %v94_v30, %v91_v5 }
  0xb1   :  { %v145_v39 = vrot.slane %v144_v33, 4 }
  0xb2   :  { %v106_v47 = vpop.xlane.xlu1 %105  ;;  %v138_v51 = vrot.slane %v137_v44, 4 }
  0xb3   :  { %v146_v34 = vadd.f32 %v145_v39, %v144_v33  ;;  %v103_v52 = vpop.xlane.xlu0 %102 }
  0xb4   :  { %v139_v40 = vadd.f32 %v138_v51, %v137_v44  ;;  %v151_v48 = vadd.f32 %v106_v47, %v103_v52 }
  0xb5   :  { %v147_v56 = vrot.slane %v146_v34, 2 }
  0xb6   :  { %v112_v55 = vpop.xlane.xlu1 %111  ;;  %v140_v62 = vrot.slane %v139_v40, 2  ;;  %v152_v43 = vrot.slane %v151_v48, 4 }
  0xb7   :  { %v148_v57 = vadd.f32 %v147_v56, %v146_v34 }
  0xb8   :  { %v141_v0 = vadd.f32 %v140_v62, %v139_v40  ;;  %v153_v17 = vadd.f32 %v152_v43, %v151_v48 }
  0xb9   :  { %v149_v2 = vrot.slane %v148_v57, 1  ;;  %v109_v9 = vpop.xlane.xlu0 %108 }
  0xba   :  { %v158_v14 = vadd.f32 %v112_v55, %v109_v9  ;;  %v142_v31 = vrot.slane %v141_v0, 1  ;;  %v154_v32 = vrot.slane %v153_v17, 2 }
  0xbb   :  { %v150_v21 = vadd.f32 %v149_v2, %v148_v57  ;;  %v118_v30 = vpop.xlane.xlu1 %117 }
  0xbc   :  { %v159_v5 = vrot.slane %v158_v14, 4  ;;  %v143_v33 = vadd.f32 %v142_v31, %v141_v0  ;;  %v155_v39 = vadd.f32 %v154_v32, %v153_v17 }
  0xbd   :  { %v115_v38 = vpop.xlane.xlu0 %114  ;;  %v202_v60 = vmul.f32 0.00390625, %v150_v21 }
  0xbe   :  { %v160_v44 = vadd.f32 %v159_v5, %v158_v14  ;;  %v165_v47 = vadd.f32 %v118_v30, %v115_v38  ;;  %v156_v51 = vrot.slane %v155_v39, 1  ;;  %v201_v34 = vmul.f32 0.00390625, %v143_v33 }
  0xbf   :  { %v1202_v40 = vsub.f32 %v1041_v12, %v202_v60  ;;  %v1211_v62 = vsub.f32 %v1037_v3, %v202_v60  ;;  %v124_v38 = vpop.xlane.xlu1 %123 }
  0xc0   :  { %v161_v52 = vrot.slane %v160_v44, 2  ;;  %v166_v56 = vrot.slane %v165_v47, 4  ;;  %v157_v48 = vadd.f32 %v156_v51, %v155_v39  ;;  %v1205_v55 = vsub.f32 %v1059_v36, %v201_v34 }
  0xc1   :  { %v1208_v57 = vsub.f32 %v1039_v10, %v201_v34  ;;  %v228_v21 = vmul.f32 %v1202_v40, %v1202_v40  ;;  %v227_v5 = vmul.f32 %v1211_v62, %v1211_v62 }
  0xc2   :  { %v162_v43 = vadd.f32 %v161_v52, %v160_v44  ;;  %v167_v2 = vadd.f32 %v166_v56, %v165_v47  ;;  %v226_v0 = vmul.f32 %v1205_v55, %v1205_v55  ;;  %v203_v30 = vmul.f32 0.00390625, %v157_v48 }
  0xc3   :  { %v225_v17 = vmul.f32 %v1208_v57, %v1208_v57  ;;  %v121_v31 = vpop.xlane.xlu0 %120  ;;  %v247_v3 = vsel %vm88_vm0, %v227_v5, 0.0 }
  0xc4   :  { %v163_v9 = vrot.slane %v162_v43, 1  ;;  %v168_v14 = vrot.slane %v167_v2, 2  ;;  %v244_v32 = vsel %vm88_vm0, %v226_v0, 0.0  ;;  %v172_v44 = vadd.f32 %v124_v38, %v121_v31 }
  0xc5   :  { %v241_v60 = vsel %vm88_vm0, %v225_v17, 0.0  ;;  %245 = vadd.xlane.f32.xlu1 %v244_v32  ;;  %v1224_v47 = vsub.f32 %v1065_v46, %v203_v30  ;;  %v1227_v51 = vsub.f32 %v1068_v50, %v203_v30  ;;  %v250_v17 = vsel %vm88_vm0, %v228_v21, 0.0 }
  0xc6   :  { %v164_v33 = vadd.f32 %v163_v9, %v162_v43  ;;  %v169_v39 = vadd.f32 %v168_v14, %v167_v2  ;;  %242 = vadd.xlane.f32.xlu0 %v241_v60  ;;  %v173_v52 = vrot.slane %v172_v44, 4 }
  0xc7   :  { %v130_v56 = vpop.xlane.xlu1 %129  ;;  %v230_v48 = vmul.f32 %v1224_v47, %v1224_v47  ;;  %v229_v43 = vmul.f32 %v1227_v51, %v1227_v51 }
  0xc8   :  { %v170_v34 = vrot.slane %v169_v39, 1  ;;  %v204_v0 = vmul.f32 0.00390625, %v164_v33  ;;  %v174_v38 = vadd.f32 %v173_v52, %v172_v44 }
  0xc9   :  { %251 = vadd.xlane.f32.xlu1 %v250_v17  ;;  %v127_v14 = vpop.xlane.xlu0 %126  ;;  %v256_v60 = vsel %vm88_vm0, %v230_v48, 0.0  ;;  %v253_v5 = vsel %vm88_vm0, %v229_v43, 0.0 }
  0xca   :  { %v171_v2 = vadd.f32 %v170_v34, %v169_v39  ;;  %248 = vadd.xlane.f32.xlu0 %v247_v3  ;;  %v1236_v9 = vsub.f32 %v1081_v1, %v204_v0  ;;  %v1239_v31 = vsub.f32 %v1096_v18, %v204_v0  ;;  %v175_v21 = vrot.slane %v174_v38, 2 }
  0xcb   :  { %v179_v32 = vadd.f32 %v130_v56, %v127_v14  ;;  %v136_v34 = vpop.xlane.xlu1 %135 }
  0xcc   :  { %v232_v30 = vmul.f32 %v1236_v9, %v1236_v9  ;;  %v231_v33 = vmul.f32 %v1239_v31, %v1239_v31  ;;  %v205_v3 = vmul.f32 0.00390625, %v171_v2  ;;  %v176_v39 = vadd.f32 %v175_v21, %v174_v38 }
  0xcd   :  { %v180_v44 = vrot.slane %v179_v32, 4  ;;  %257 = vadd.xlane.f32.xlu1 %v256_v60  ;;  %v133_v52 = vpop.xlane.xlu0 %132 }
  0xce   :  { %254 = vadd.xlane.f32.xlu0 %v253_v5  ;;  %v1248_v0 = vsub.f32 %v1110_v37, %v205_v3  ;;  %v1251_v56 = vsub.f32 %v1113_v41, %v205_v3  ;;  %v177_v17 = vrot.slane %v176_v39, 1  ;;  %v186_v43 = vadd.f32 %v136_v34, %v133_v52 }
  0xcf   :  { %v181_v48 = vadd.f32 %v180_v44, %v179_v32  ;;  %v262_v14 = vsel %vm88_vm0, %v232_v30, 0.0  ;;  %v259_v18 = vsel %vm88_vm0, %v231_v33, 0.0 }
  0xd0   :  { %v234_v2 = vmul.f32 %v1248_v0, %v1248_v0  ;;  %v233_v38 = vmul.f32 %v1251_v56, %v1251_v56  ;;  %v178_v21 = vadd.f32 %v177_v17, %v176_v39  ;;  %v187_v5 = vrot.slane %v186_v43, 4 }
  0xd1   :  { %v182_v60 = vrot.slane %v181_v48, 2  ;;  %263 = vadd.xlane.f32.xlu1 %v262_v14 }
  0xd2   :  { %260 = vadd.xlane.f32.xlu0 %v259_v18  ;;  %v188_v41 = vadd.f32 %v187_v5, %v186_v43  ;;  %v206_v37 = vmul.f32 0.00390625, %v178_v21  ;;  %v268_v32 = vsel %vm88_vm0, %v234_v2, 0.0  ;;  %v265_v30 = vsel %vm88_vm0, %v233_v38, 0.0 }
  0xd3   :  { %v183_v3 = vadd.f32 %v182_v60, %v181_v48 }
  0xd4   :  { %v189_v33 = vrot.slane %v188_v41, 2  ;;  %v1262_v34 = vsub.f32 %v1123_v58, %v206_v37  ;;  %v1265_v39 = vsub.f32 %v1136_v19, %v206_v37 }
  0xd5   :  { %v184_v44 = vrot.slane %v183_v3, 1  ;;  %269 = vadd.xlane.f32.xlu1 %v268_v32 }
  0xd6   :  { %266 = vadd.xlane.f32.xlu0 %v265_v30  ;;  %v190_v17 = vadd.f32 %v189_v33, %v188_v41  ;;  %v236_v18 = vmul.f32 %v1262_v34, %v1262_v34  ;;  %v235_v48 = vmul.f32 %v1265_v39, %v1265_v39 }
  0xd7   :  { %v185_v52 = vadd.f32 %v184_v44, %v183_v3 }
  0xd8   :  { %v191_v43 = vrot.slane %v190_v17, 1  ;;  %v274_v14 = vsel %vm88_vm0, %v236_v18, 0.0  ;;  %v271_v38 = vsel %vm88_vm0, %v235_v48, 0.0 }
  0xd9   :  { %v207_v2 = vmul.f32 0.00390625, %v185_v52  ;;  %275 = vadd.xlane.f32.xlu1 %v274_v14  ;;  %v796_v14 = vmax.f32 %v1131_v11, 1e-16  ;;  %v686_v11 = vsel %vm88_vm0, %v1085_v6, 0.0 }
  0xda   :  { %v192_v21 = vadd.f32 %v191_v43, %v190_v17  ;;  %272 = vadd.xlane.f32.xlu0 %v271_v38  ;;  %v797_v43 = vmax.f32 %v1125_v59, 1e-16  ;;  %v684_v38 = vsel %vm88_vm0, %v1055_v29, 0.0  ;;  %v667_v59 = vmul.f32 %v1099_v23, %v1070_v53 }
  0xdb   :  { %v1274_v37 = vsub.f32 %v1147_v42, %v207_v2  ;;  %v1277_v41 = vsub.f32 %v1158_v7, %v207_v2  ;;  %v683_v2 = vsel %vm88_vm0, %v1072_v54, 0.0  ;;  %v666_v54 = vmul.f32 %v1108_v35, %v1083_v4 }
  0xdc   :  { %v208_v3 = vmul.f32 0.00390625, %v192_v21  ;;  %889 = vrsqrt.f32 %v797_v43  ;;  %v676_v21 = vsel %vm88_vm0, %v1053_v26, 0.0  ;;  %v679_v29 = vsel %vm88_vm0, %v1087_v8, 0.0 }
  0xdd   :  { %v238_v60 = vmul.f32 %v1274_v37, %v1274_v37  ;;  %v237_v5 = vmul.f32 %v1277_v41, %v1277_v41  ;;  %891 = vrsqrt.f32 %v796_v14  ;;  %v799_v8 = vmax.f32 %v1196_v20, 1e-16 }
  0xde   :  { %v1286_v44 = vsub.f32 %v1167_v25, %v208_v3  ;;  %v1289_v33 = vsub.f32 %v1174_v27, %v208_v3  ;;  %v798_v35 = vmax.f32 %v1199_v22, 1e-16  ;;  %v675_v20 = vmul.f32 %v1180_v45, %v1155_v63 }
  0xdf   :  { %v280_v32 = vsel %vm88_vm0, %v238_v60, 0.0  ;;  %v277_v30 = vsel %vm88_vm0, %v237_v5, 0.0  ;;  %v677_v60 = vsel %vm88_vm0, %v1051_v24, 0.0  ;;  %v685_v5 = vadd.f32 %v684_v38, %v683_v2 }
  0xe0   :  { %281 = vadd.xlane.f32.xlu1 %v280_v32  ;;  %278 = vadd.xlane.f32.xlu0 %v277_v30  ;;  %v240_v52 = vmul.f32 %v1286_v44, %v1286_v44  ;;  %v239_v17 = vmul.f32 %v1289_v33, %v1289_v33  ;;  %v678_v3 = vadd.f32 %v677_v60, %v676_v21  ;;  %v688_v24 = vsel %vm88_vm0, %v667_v59, 0.0 }
  0xe1   :  { %v687_v30 = vadd.f32 %v686_v11, %v685_v5  ;;  %893 = vrsqrt.f32 %v799_v8  ;;  %v697_v2 = vsel %vm88_vm0, %v1127_v61, 0.0  ;;  %v698_v38 = vsel %vm88_vm0, %v1141_v28, 0.0 }
  0xe2   :  { %v286_v18 = vsel %vm88_vm0, %v240_v52, 0.0  ;;  %v283_v48 = vsel %vm88_vm0, %v239_v17, 0.0  ;;  %v680_v26 = vadd.f32 %v679_v29, %v678_v3  ;;  %v681_v17 = vsel %vm88_vm0, %v666_v54, 0.0  ;;  %v1422_v3 = vld [vmem:[#allocation16_spill] sm:$0xff]  ;;  %v1423_v54 = vld [vmem:[#allocation15_spill] sm:$0xff] }
  0xe3   :  { %895 = vrsqrt.f32 %v798_v35  ;;  %v690_v21 = vsel %vm88_vm0, %v1134_v15, 0.0  ;;  %v699_v60 = vadd.f32 %v698_v38, %v697_v2  ;;  %v691_v5 = vsel %vm88_vm0, %v1149_v49, 0.0 }
  0xe4   :  { %287 = vadd.xlane.f32.xlu1 %v286_v18  ;;  %284 = vadd.xlane.f32.xlu0 %v283_v48  ;;  %v689_v18 = vadd.f32 %v688_v24, %v687_v30  ;;  %v682_v48 = vadd.f32 %v681_v17, %v680_v26  ;;  %v700_v22 = vsel %vm88_vm0, %v1162_v16, 0.0  ;;  %v674_v59 = vmul.f32 %v1422_v3, %v1160_v13 }
  0xe5   :  { %v692_v61 = vadd.f32 %v691_v5, %v690_v21  ;;  %v701_v11 = vadd.f32 %v700_v22, %v699_v60  ;;  %v693_v28 = vsel %vm88_vm0, %v1423_v54, 0.0  ;;  %v702_v15 = vsel %vm88_vm0, %v675_v20, 0.0 }
  0xe6   :  { %v695_v49 = vsel %vm88_vm0, %v674_v59, 0.0 }
  0xe7   :  { %v703_v26 = vadd.f32 %v702_v15, %v701_v11 }
  0xe9   :  { %v890_v32 = vpop.eup %889 }
  0xea   :  { %v892_v52 = vpop.eup %891  ;;  %v805_v53 = vmul.f32 %v890_v32, %v689_v18  ;;  %v694_v32 = vadd.f32 %v693_v28, %v692_v61 }
  0xeb   :  { %v804_v23 = vmul.f32 %v892_v52, %v682_v48 }
  0xec   :  { %v809_v43 = vsub.f32 1.0, %v805_v53  ;;  %v696_v63 = vadd.f32 %v695_v49, %v694_v32 }
  0xed   :  { %v808_v6 = vsub.f32 1.0, %v804_v23 }
  0xee   :  { %v815_v14 = vsel %vm88_vm0, %v809_v43, 0.0  ;;  %v894_v29 = vpop.eup %893 }
  0xef   :  { %v812_v4 = vsel %vm88_vm0, %v808_v6, 0.0  ;;  %816 = vadd.xlane.f32.xlu1 %v815_v14  ;;  %v1339_v45 = vmul.f32 %v894_v29, %v703_v26 }
  0xf0   :  { %813 = vadd.xlane.f32.xlu0 %v812_v4  ;;  %v896_v30 = vpop.eup %895 }
  0xf1   :  { %v1341_v16 = vmul.f32 %v896_v30, %v696_v63 }
 0x14e   :  { %v246_v52 = vpop.xlane.xlu1 %245 }
 0x14f   :  { %v243_v13 = vpop.xlane.xlu0 %242 }
 0x150   :  { %v289_v24 = vadd.f32 %v246_v52, %v243_v13 }
 0x152   :  { %v290_v17 = vrot.slane %v289_v24, 4  ;;  %v252_v18 = vpop.xlane.xlu1 %251 }
 0x153   :  { %v249_v48 = vpop.xlane.xlu0 %248 }
 0x154   :  { %v291_v53 = vadd.f32 %v290_v17, %v289_v24  ;;  %v296_v23 = vadd.f32 %v252_v18, %v249_v48 }
 0x156   :  { %v292_v43 = vrot.slane %v291_v53, 2  ;;  %v297_v6 = vrot.slane %v296_v23, 4  ;;  %v258_v14 = vpop.xlane.xlu1 %257 }
 0x157   :  { %v255_v4 = vpop.xlane.xlu0 %254 }
 0x158   :  { %v293_v8 = vadd.f32 %v292_v43, %v291_v53  ;;  %v298_v35 = vadd.f32 %v297_v6, %v296_v23  ;;  %v303_v2 = vadd.f32 %v258_v14, %v255_v4 }
 0x15a   :  { %v294_v38 = vrot.slane %v293_v8, 1  ;;  %v299_v21 = vrot.slane %v298_v35, 2  ;;  %v304_v60 = vrot.slane %v303_v2, 4  ;;  %v264_v5 = vpop.xlane.xlu1 %263 }
 0x15b   :  { %v261_v20 = vpop.xlane.xlu0 %260 }
 0x15c   :  { %v295_v22 = vadd.f32 %v294_v38, %v293_v8  ;;  %v300_v3 = vadd.f32 %v299_v21, %v298_v35  ;;  %v305_v59 = vadd.f32 %v304_v60, %v303_v2  ;;  %v310_v61 = vadd.f32 %v264_v5, %v261_v20 }
 0x15e   :  { %v353_v11 = vmul.f32 0.0019607844, %v295_v22  ;;  %v301_v54 = vrot.slane %v300_v3, 1  ;;  %v306_v28 = vrot.slane %v305_v59, 2  ;;  %v311_v29 = vrot.slane %v310_v61, 4  ;;  %v270_v15 = vpop.xlane.xlu1 %269 }
 0x15f   :  { %v267_v32 = vpop.xlane.xlu0 %266 }
 0x160   :  { %897 = vrsqrt.f32 %v353_v11  ;;  %v302_v49 = vadd.f32 %v301_v54, %v300_v3  ;;  %v307_v30 = vadd.f32 %v306_v28, %v305_v59  ;;  %v312_v26 = vadd.f32 %v311_v29, %v310_v61 }
 0x161   :  { %v317_v63 = vadd.f32 %v270_v15, %v267_v32  ;;  %v386_v59 = vand.u32 2147483647, %v1205_v55  ;;  %v385_v61 = vand.u32 2147483647, %v1208_v57  ;;  %v388_v55 = vand.u32 2147483647, %v1202_v40 }
 0x162   :  { %v354_v52 = vmul.f32 0.0019607844, %v302_v49  ;;  %v308_v13 = vrot.slane %v307_v30, 1  ;;  %v313_v24 = vrot.slane %v312_v26, 2  ;;  %v276_v53 = vpop.xlane.xlu1 %275  ;;  %v387_v57 = vand.u32 2147483647, %v1211_v62 }
 0x163   :  { %v318_v17 = vrot.slane %v317_v63, 4  ;;  %v273_v43 = vpop.xlane.xlu0 %272 }
 0x164   :  { %899 = vrsqrt.f32 %v354_v52  ;;  %v309_v18 = vadd.f32 %v308_v13, %v307_v30  ;;  %v314_v48 = vadd.f32 %v313_v24, %v312_v26  ;;  %v324_v4 = vadd.f32 %v276_v53, %v273_v43 }
 0x165   :  { %v319_v23 = vadd.f32 %v318_v17, %v317_v63 }
 0x166   :  { %v355_v6 = vmul.f32 0.0019607844, %v309_v18  ;;  %v315_v14 = vrot.slane %v314_v48, 1  ;;  %v325_v2 = vrot.slane %v324_v4, 4 }
 0x167   :  { %v320_v8 = vrot.slane %v319_v23, 2 }
 0x168   :  { %901 = vrsqrt.f32 %v355_v6  ;;  %v316_v35 = vadd.f32 %v315_v14, %v314_v48  ;;  %v326_v60 = vadd.f32 %v325_v2, %v324_v4  ;;  %v390_v4 = vand.u32 2147483647, %v1224_v47 }
 0x169   :  { %v321_v38 = vadd.f32 %v320_v8, %v319_v23  ;;  %v282_v5 = vpop.xlane.xlu1 %281  ;;  %v279_v20 = vpop.xlane.xlu0 %278 }
 0x16a   :  { %v356_v21 = vmul.f32 0.0019607844, %v316_v35  ;;  %v331_v3 = vadd.f32 %v282_v5, %v279_v20  ;;  %v327_v11 = vrot.slane %v326_v60, 2 }
 0x16b   :  { %v322_v22 = vrot.slane %v321_v38, 1 }
 0x16c   :  { %903 = vrsqrt.f32 %v356_v21  ;;  %v332_v29 = vrot.slane %v331_v3, 4  ;;  %v328_v15 = vadd.f32 %v327_v11, %v326_v60 }
 0x16d   :  { %v898_v54 = vpop.eup %897  ;;  %v323_v28 = vadd.f32 %v322_v22, %v321_v38  ;;  %v288_v63 = vpop.xlane.xlu1 %287  ;;  %v389_v38 = vand.u32 2147483647, %v1227_v51  ;;  %v392_v51 = vand.u32 2147483647, %v1236_v9 }
 0x16e   :  { %v402_v32 = vmul.f32 %v898_v54, %v386_v59  ;;  %v401_v49 = vmul.f32 %v898_v54, %v385_v61  ;;  %v333_v26 = vadd.f32 %v332_v29, %v331_v3  ;;  %v285_v52 = vpop.xlane.xlu0 %284  ;;  %v329_v13 = vrot.slane %v328_v15, 1 }
 0x16f   :  { %v357_v30 = vmul.f32 0.0019607844, %v323_v28  ;;  %v338_v24 = vadd.f32 %v288_v63, %v285_v52 }
 0x170   :  { %v418_v17 = vsub.f32 0.0, %v402_v32  ;;  %v417_v18 = vsub.f32 0.0, %v401_v49  ;;  %v334_v53 = vrot.slane %v333_v26, 2  ;;  %v330_v23 = vadd.f32 %v329_v13, %v328_v15 }
 0x171   :  { %v900_v48 = vpop.eup %899  ;;  %905 = vrsqrt.f32 %v357_v30  ;;  %v339_v43 = vrot.slane %v338_v24, 4  ;;  %v391_v32 = vand.u32 2147483647, %v1239_v31 }
 0x172   :  { %v435_v6 = vmul.f32 1.442695, %v418_v17  ;;  %v433_v14 = vmul.f32 1.442695, %v417_v18  ;;  %v335_v8 = vadd.f32 %v334_v53, %v333_v26  ;;  %v404_v35 = vmul.f32 %v900_v48, %v388_v55 }
 0x173   :  { %v403_v2 = vmul.f32 %v900_v48, %v387_v57  ;;  %v358_v21 = vmul.f32 0.0019607844, %v330_v23  ;;  %v340_v60 = vadd.f32 %v339_v43, %v338_v24  ;;  %v394_v24 = vand.u32 2147483647, %v1248_v0 }
 0x174   :  { %907 = vpow2.f32 %v435_v6  ;;  %v336_v40 = vrot.slane %v335_v8, 1  ;;  %v420_v62 = vsub.f32 0.0, %v404_v35  ;;  %v393_v18 = vand.u32 2147483647, %v1251_v56 }
 0x175   :  { %v902_v5 = vpop.eup %901  ;;  %909 = vpow2.f32 %v433_v14  ;;  %v419_v20 = vsub.f32 0.0, %v403_v2  ;;  %v341_v22 = vrot.slane %v340_v60, 2  ;;  %v370_v57 = vand.u32 2147483647, %v1059_v36 }
 0x176   :  { %911 = vrsqrt.f32 %v358_v21  ;;  %v406_v3 = vmul.f32 %v902_v5, %v390_v4  ;;  %v405_v59 = vmul.f32 %v902_v5, %v389_v38  ;;  %v337_v61 = vadd.f32 %v336_v40, %v335_v8 }
 0x177   :  { %v439_v11 = vmul.f32 1.442695, %v420_v62  ;;  %v437_v47 = vmul.f32 1.442695, %v419_v20  ;;  %v342_v54 = vadd.f32 %v341_v22, %v340_v60  ;;  %v369_v53 = vand.u32 2147483647, %v1039_v10 }
 0x178   :  { %v422_v28 = vsub.f32 0.0, %v406_v3  ;;  %v421_v29 = vsub.f32 0.0, %v405_v59  ;;  %v359_v49 = vmul.f32 0.0019607844, %v337_v61  ;;  %v396_v56 = vand.u32 2147483647, %v1262_v34 }
 0x179   :  { %v904_v15 = vpop.eup %903  ;;  %913 = vpow2.f32 %v439_v11  ;;  %v343_v30 = vrot.slane %v342_v54, 1  ;;  %v395_v2 = vand.u32 2147483647, %v1265_v39  ;;  %v372_v10 = vand.u32 2147483647, %v1041_v12  ;;  %v1424_v62 = vld [vmem:[#allocation11_spill] sm:$0xff] }
 0x17a   :  { %915 = vpow2.f32 %v437_v47  ;;  %v443_v26 = vmul.f32 1.442695, %v422_v28  ;;  %v441_v63 = vmul.f32 1.442695, %v421_v29  ;;  %v408_v52 = vmul.f32 %v904_v15, %v392_v51 }
 0x17b   :  { %917 = vrsqrt.f32 %v359_v49  ;;  %v407_v13 = vmul.f32 %v904_v15, %v391_v32  ;;  %v344_v17 = vadd.f32 %v343_v30, %v342_v54  ;;  %v371_v20 = vand.u32 2147483647, %v1424_v62 }
 0x17c   :  { %919 = vpow2.f32 %v443_v26  ;;  %v424_v48 = vsub.f32 0.0, %v408_v52  ;;  %v398_v59 = vand.u32 2147483647, %v1274_v37  ;;  %v374_v34 = vand.u32 2147483647, %v1065_v46 }
 0x17d   :  { %921 = vpow2.f32 %v441_v63  ;;  %v423_v9 = vsub.f32 0.0, %v407_v13  ;;  %v360_v31 = vmul.f32 0.0019607844, %v344_v17  ;;  %v397_v28 = vand.u32 2147483647, %v1277_v41 }
 0x17e   :  { %v906_v55 = vpop.eup %905  ;;  %v447_v23 = vmul.f32 1.442695, %v424_v48  ;;  %v373_v51 = vand.u32 2147483647, %v1068_v50  ;;  %v400_v32 = vand.u32 2147483647, %v1286_v44 }
 0x17f   :  { %v445_v43 = vmul.f32 1.442695, %v423_v9  ;;  %v410_v6 = vmul.f32 %v906_v55, %v394_v24  ;;  %v409_v14 = vmul.f32 %v906_v55, %v393_v18  ;;  %923 = vrsqrt.f32 %v360_v31 }
 0x180   :  { %925 = vpow2.f32 %v447_v23  ;;  %v399_v63 = vand.u32 2147483647, %v1289_v33  ;;  %v376_v48 = vand.u32 2147483647, %v1081_v1 }
 0x181   :  { %v908_v4 = vpop.eup %907  ;;  %v426_v0 = vsub.f32 0.0, %v410_v6  ;;  %v425_v8 = vsub.f32 0.0, %v409_v14  ;;  %927 = vpow2.f32 %v445_v43  ;;  %v1426_v6 = vld [vmem:[#allocation13_spill] sm:$0xff] }
 0x182   :  { %v910_v35 = vpop.eup %909  ;;  %v466_v38 = vmul.f32 %v908_v4, %v370_v57  ;;  %v378_v14 = vand.u32 2147483647, %v1426_v6 }
 0x183   :  { %v912_v21 = vpop.eup %911  ;;  %v465_v36 = vmul.f32 %v910_v35, %v369_v53  ;;  %v451_v60 = vmul.f32 1.442695, %v426_v0  ;;  %v449_v5 = vmul.f32 1.442695, %v425_v8 }
 0x184   :  { %v482_v40 = vsub.f32 %v370_v57, %v466_v38  ;;  %v412_v22 = vmul.f32 %v912_v21, %v396_v56  ;;  %v411_v3 = vmul.f32 %v912_v21, %v395_v2  ;;  %v1425_v57 = vld [vmem:[#allocation12_spill] sm:$0xff] }
 0x185   :  { %v481_v61 = vsub.f32 %v369_v53, %v465_v36  ;;  %929 = vpow2.f32 %v451_v60  ;;  %v375_v33 = vand.u32 2147483647, %v1425_v57  ;;  %v1427_v36 = vld [vmem:[#allocation14_spill] sm:$0xff] }
 0x186   :  { %v914_v39 = vpop.eup %913  ;;  %v500_v11 = vsel %vm88_vm0, %v482_v40, 0.0  ;;  %931 = vpow2.f32 %v449_v5  ;;  %v428_v47 = vsub.f32 0.0, %v412_v22  ;;  %v427_v54 = vsub.f32 0.0, %v411_v3 }
 0x187   :  { %v916_v12 = vpop.eup %915  ;;  %501 = vadd.xlane.f32.xlu1 %v500_v11  ;;  %v497_v29 = vsel %vm88_vm0, %v481_v61, 0.0  ;;  %v468_v15 = vmul.f32 %v914_v39, %v372_v10 }
 0x188   :  { %v918_v37 = vpop.eup %917  ;;  %498 = vadd.xlane.f32.xlu0 %v497_v29  ;;  %v467_v46 = vmul.f32 %v916_v12, %v371_v20  ;;  %v455_v49 = vmul.f32 1.442695, %v428_v47  ;;  %v453_v30 = vmul.f32 1.442695, %v427_v54  ;;  %v380_v54 = vand.u32 2147483647, %v1123_v58 }
 0x189   :  { %v920_v26 = vpop.eup %919  ;;  %v484_v52 = vsub.f32 %v372_v10, %v468_v15  ;;  %v414_v13 = vmul.f32 %v918_v37, %v398_v59  ;;  %v413_v24 = vmul.f32 %v918_v37, %v397_v28  ;;  %v377_v10 = vand.u32 2147483647, %v1427_v36 }
 0x18a   :  { %v922_v41 = vpop.eup %921  ;;  %v483_v17 = vsub.f32 %v371_v20, %v467_v46  ;;  %v470_v18 = vmul.f32 %v920_v26, %v374_v34  ;;  %933 = vpow2.f32 %v455_v49  ;;  %v379_v28 = vand.u32 2147483647, %v1136_v19 }
 0x18b   :  { %v506_v50 = vsel %vm88_vm0, %v484_v52, 0.0  ;;  %v469_v9 = vmul.f32 %v922_v41, %v373_v51  ;;  %935 = vpow2.f32 %v453_v30  ;;  %v430_v44 = vsub.f32 0.0, %v414_v13 }
 0x18c   :  { %507 = vadd.xlane.f32.xlu1 %v506_v50  ;;  %v503_v55 = vsel %vm88_vm0, %v483_v17, 0.0  ;;  %v486_v31 = vsub.f32 %v374_v34, %v470_v18  ;;  %v429_v53 = vsub.f32 0.0, %v413_v24  ;;  %v924_v23 = vpop.eup %923  ;;  %v382_v30 = vand.u32 2147483647, %v1147_v42 }
 0x18d   :  { %504 = vadd.xlane.f32.xlu0 %v503_v55  ;;  %v485_v43 = vsub.f32 %v373_v51, %v469_v9  ;;  %v459_v4 = vmul.f32 1.442695, %v430_v44  ;;  %v926_v1 = vpop.eup %925  ;;  %v416_v35 = vmul.f32 %v924_v23, %v400_v32  ;;  %v415_v56 = vmul.f32 %v924_v23, %v399_v63 }
 0x18e   :  { %v512_v0 = vsel %vm88_vm0, %v486_v31, 0.0  ;;  %v457_v8 = vmul.f32 1.442695, %v429_v53  ;;  %v928_v2 = vpop.eup %927  ;;  %v472_v21 = vmul.f32 %v926_v1, %v376_v48  ;;  %v381_v26 = vand.u32 2147483647, %v1158_v7  ;;  %v814_v1 = vpop.xlane.xlu0 %813 }
 0x18f   :  { %v509_v38 = vsel %vm88_vm0, %v485_v43, 0.0  ;;  %937 = vpow2.f32 %v459_v4  ;;  %v471_v60 = vmul.f32 %v928_v2, %v375_v33  ;;  %v432_v5 = vsub.f32 0.0, %v416_v35  ;;  %v817_v4 = vpop.xlane.xlu1 %816 }
 0x190   :  { %513 = vadd.xlane.f32.xlu1 %v512_v0  ;;  %939 = vpow2.f32 %v457_v8  ;;  %v431_v40 = vsub.f32 0.0, %v415_v56  ;;  %v488_v62 = vsub.f32 %v376_v48, %v472_v21  ;;  %v384_v18 = vand.u32 2147483647, %v1167_v25 }
 0x191   :  { %510 = vadd.xlane.f32.xlu0 %v509_v38  ;;  %v487_v22 = vsub.f32 %v375_v33, %v471_v60  ;;  %v463_v3 = vmul.f32 1.442695, %v432_v5  ;;  %v383_v50 = vand.u32 2147483647, %v1174_v27  ;;  %v811_v53 = vsub.f32 1.0, %v1339_v45 }
 0x192   :  { %v930_v20 = vpop.eup %929  ;;  %v461_v59 = vmul.f32 1.442695, %v431_v40  ;;  %v518_v34 = vsel %vm88_vm0, %v488_v62, 0.0  ;;  %v810_v25 = vsub.f32 1.0, %v1341_v16 }
 0x193   :  { %v932_v61 = vpop.eup %931  ;;  %v474_v39 = vmul.f32 %v930_v20, %v378_v14  ;;  %v515_v11 = vsel %vm88_vm0, %v487_v22, 0.0  ;;  %941 = vpow2.f32 %v463_v3  ;;  %v821_v6 = vsel %vm88_vm0, %v811_v53, 0.0 }
 0x194   :  { %519 = vadd.xlane.f32.xlu1 %v518_v34  ;;  %v473_v47 = vmul.f32 %v932_v61, %v377_v10  ;;  %943 = vpow2.f32 %v461_v59 }
 0x195   :  { %516 = vadd.xlane.f32.xlu0 %v515_v11  ;;  %v490_v12 = vsub.f32 %v378_v14, %v474_v39  ;;  %v818_v14 = vsel %vm88_vm0, %v810_v25, 0.0 }
 0x196   :  { %v489_v29 = vsub.f32 %v377_v10, %v473_v47 }
 0x197   :  { %v934_v15 = vpop.eup %933  ;;  %v524_v51 = vsel %vm88_vm0, %v490_v12, 0.0 }
 0x198   :  { %v936_v37 = vpop.eup %935  ;;  %525 = vadd.xlane.f32.xlu1 %v524_v51  ;;  %v521_v32 = vsel %vm88_vm0, %v489_v29, 0.0  ;;  %v476_v46 = vmul.f32 %v934_v15, %v380_v54 }
 0x199   :  { %522 = vadd.xlane.f32.xlu0 %v521_v32  ;;  %v475_v49 = vmul.f32 %v936_v37, %v379_v28  ;;  %v824_v37 = vadd.f32 %v817_v4, %v814_v1 }
 0x19a   :  { %v492_v58 = vsub.f32 %v380_v54, %v476_v46 }
 0x19b   :  { %v491_v63 = vsub.f32 %v379_v28, %v475_v49 }
 0x19c   :  { %v938_v52 = vpop.eup %937  ;;  %v530_v19 = vsel %vm88_vm0, %v492_v58, 0.0 }
 0x19d   :  { %v940_v13 = vpop.eup %939  ;;  %531 = vadd.xlane.f32.xlu1 %v530_v19  ;;  %v527_v24 = vsel %vm88_vm0, %v491_v63, 0.0  ;;  %v478_v41 = vmul.f32 %v938_v52, %v382_v30 }
 0x19e   :  { %528 = vadd.xlane.f32.xlu0 %v527_v24  ;;  %v477_v17 = vmul.f32 %v940_v13, %v381_v26  ;;  %v825_v13 = vrot.slane %v824_v37, 4 }
 0x19f   :  { %v494_v48 = vsub.f32 %v382_v30, %v478_v41 }
 0x1a0   :  { %v493_v42 = vsub.f32 %v381_v26, %v477_v17  ;;  %v942_v9 = vpop.eup %941 }
 0x1a1   :  { %v536_v7 = vsel %vm88_vm0, %v494_v48, 0.0  ;;  %v944_v44 = vpop.eup %943  ;;  %v480_v31 = vmul.f32 %v942_v9, %v384_v18 }
 0x1a2   :  { %537 = vadd.xlane.f32.xlu1 %v536_v7  ;;  %v533_v55 = vsel %vm88_vm0, %v493_v42, 0.0  ;;  %v479_v57 = vmul.f32 %v944_v44, %v383_v50 }
 0x1a3   :  { %534 = vadd.xlane.f32.xlu0 %v533_v55  ;;  %v496_v33 = vsub.f32 %v384_v18, %v480_v31  ;;  %v826_v55 = vadd.f32 %v825_v13, %v824_v37 }
 0x1a4   :  { %v495_v23 = vsub.f32 %v383_v50, %v479_v57 }
 0x1a5   :  { %v542_v43 = vsel %vm88_vm0, %v496_v33, 0.0 }
 0x1a6   :  { %543 = vadd.xlane.f32.xlu1 %v542_v43  ;;  %v539_v27 = vsel %vm88_vm0, %v495_v23, 0.0 }
 0x1a7   :  { %540 = vadd.xlane.f32.xlu0 %v539_v27 }
 0x1aa   :  { %822 = vadd.xlane.f32.xlu1 %v821_v6 }
 0x1ab   :  { %819 = vadd.xlane.f32.xlu0 %v818_v14 }
 0x210   :  { %v502_v0 = vpop.xlane.xlu1 %501 }
 0x211   :  { %v499_v8 = vpop.xlane.xlu0 %498 }
 0x212   :  { %v545_v16 = vadd.f32 %v502_v0, %v499_v8  ;;  %v827_v0 = vrot.slane %v826_v55, 2 }
 0x214   :  { %v546_v10 = vrot.slane %v545_v16, 4 }
 0x215   :  { %v508_v45 = vpop.xlane.xlu1 %507 }
 0x216   :  { %v505_v35 = vpop.xlane.xlu0 %504  ;;  %v547_v22 = vadd.f32 %v546_v10, %v545_v16 }
 0x217   :  { %v552_v56 = vadd.f32 %v508_v45, %v505_v35 }
 0x218   :  { %v548_v54 = vrot.slane %v547_v22, 2 }
 0x219   :  { %v514_v2 = vpop.xlane.xlu1 %513  ;;  %v553_v38 = vrot.slane %v552_v56, 4 }
 0x21a   :  { %v511_v21 = vpop.xlane.xlu0 %510  ;;  %v549_v49 = vadd.f32 %v548_v54, %v547_v22  ;;  %v828_v22 = vadd.f32 %v827_v0, %v826_v55 }
 0x21b   :  { %v559_v36 = vadd.f32 %v514_v2, %v511_v21  ;;  %v554_v40 = vadd.f32 %v553_v38, %v552_v56 }
 0x21c   :  { %v550_v41 = vrot.slane %v549_v49, 1 }
 0x21d   :  { %v560_v60 = vrot.slane %v559_v36, 4  ;;  %v520_v5 = vpop.xlane.xlu1 %519  ;;  %v555_v34 = vrot.slane %v554_v40, 2 }
 0x21e   :  { %v517_v62 = vpop.xlane.xlu0 %516  ;;  %v551_v57 = vadd.f32 %v550_v41, %v549_v49 }
 0x21f   :  { %v566_v20 = vadd.f32 %v520_v5, %v517_v62  ;;  %v561_v3 = vadd.f32 %v560_v60, %v559_v36  ;;  %v556_v29 = vadd.f32 %v555_v34, %v554_v40 }
 0x220   :  { %v602_v45 = vsel %vm601_vm1, %v551_v57, 0.0 }
 0x221   :  { %v567_v59 = vrot.slane %v566_v20, 4  ;;  %v526_v61 = vpop.xlane.xlu1 %525  ;;  %v562_v12 = vrot.slane %v561_v3, 2  ;;  %v557_v63 = vrot.slane %v556_v29, 1 }
 0x222   :  { %v523_v39 = vpop.xlane.xlu0 %522 }
 0x223   :  { %v568_v11 = vadd.f32 %v567_v59, %v566_v20  ;;  %v573_v47 = vadd.f32 %v526_v61, %v523_v39  ;;  %v563_v30 = vadd.f32 %v562_v12, %v561_v3  ;;  %v558_v9 = vadd.f32 %v557_v63, %v556_v29 }
 0x225   :  { %v574_v28 = vrot.slane %v573_v47, 4  ;;  %v569_v15 = vrot.slane %v568_v11, 2  ;;  %v564_v17 = vrot.slane %v563_v30, 1  ;;  %v603_v6 = vsel %vm601_vm1, %v558_v9, 0.0 }
 0x226   :  { %v532_v51 = vpop.xlane.xlu1 %531  ;;  %v604_v38 = vadd.f32 %v603_v6, %v602_v45 }
 0x227   :  { %v575_v32 = vadd.f32 %v574_v28, %v573_v47  ;;  %v529_v46 = vpop.xlane.xlu0 %528  ;;  %v570_v52 = vadd.f32 %v569_v15, %v568_v11  ;;  %v565_v33 = vadd.f32 %v564_v17, %v563_v30 }
 0x228   :  { %v580_v58 = vadd.f32 %v532_v51, %v529_v46  ;;  %v829_v51 = vrot.slane %v828_v22, 1 }
 0x229   :  { %v576_v26 = vrot.slane %v575_v32, 2  ;;  %v571_v7 = vrot.slane %v570_v52, 1  ;;  %v605_v35 = vsel %vm601_vm1, %v565_v33, 0.0 }
 0x22a   :  { %v581_v19 = vrot.slane %v580_v58, 4  ;;  %v606_v62 = vadd.f32 %v605_v35, %v604_v38 }
 0x22b   :  { %v538_v24 = vpop.xlane.xlu1 %537  ;;  %v577_v18 = vadd.f32 %v576_v26, %v575_v32  ;;  %v572_v14 = vadd.f32 %v571_v7, %v570_v52 }
 0x22c   :  { %v582_v48 = vadd.f32 %v581_v19, %v580_v58  ;;  %v535_v50 = vpop.xlane.xlu0 %534  ;;  %v830_v58 = vadd.f32 %v829_v51, %v828_v22 }
 0x22d   :  { %v587_v42 = vadd.f32 %v538_v24, %v535_v50  ;;  %v578_v53 = vrot.slane %v577_v18, 1  ;;  %v607_v10 = vsel %vm601_vm1, %v572_v14, 0.0 }
 0x22e   :  { %v583_v44 = vrot.slane %v582_v48, 2  ;;  %v608_v39 = vadd.f32 %v607_v10, %v606_v62  ;;  %v838_v19 = vsel %vm601_vm1, %v830_v58, 0.0 }
 0x22f   :  { %v588_v31 = vrot.slane %v587_v42, 4  ;;  %v544_v25 = vpop.xlane.xlu1 %543  ;;  %v579_v56 = vadd.f32 %v578_v53, %v577_v18 }
 0x230   :  { %v584_v23 = vadd.f32 %v583_v44, %v582_v48  ;;  %v541_v27 = vpop.xlane.xlu0 %540 }
 0x231   :  { %v589_v43 = vadd.f32 %v588_v31, %v587_v42  ;;  %v594_v1 = vadd.f32 %v544_v25, %v541_v27  ;;  %v609_v61 = vsel %vm601_vm1, %v579_v56, 0.0 }
 0x232   :  { %v585_v4 = vrot.slane %v584_v23, 1  ;;  %v610_v12 = vadd.f32 %v609_v61, %v608_v39 }
 0x233   :  { %v590_v8 = vrot.slane %v589_v43, 2  ;;  %v595_v16 = vrot.slane %v594_v1, 4  ;;  %v823_v2 = vpop.xlane.xlu1 %822 }
 0x234   :  { %v820_v36 = vpop.xlane.xlu0 %819  ;;  %v586_v60 = vadd.f32 %v585_v4, %v584_v23  ;;  %v852_v23 = vlaneseq }
 0x235   :  { %v591_v21 = vadd.f32 %v590_v8, %v589_v43  ;;  %v596_v5 = vadd.f32 %v595_v16, %v594_v1  ;;  %v831_v40 = vadd.f32 %v823_v2, %v820_v36 }
 0x236   :  { %v611_v54 = vsel %vm601_vm1, %v586_v60, 0.0  ;;  %v853_v25 = vshrl.u32 %v852_v23, 7  ;;  %v855_v43 = vand.u32 127, %v852_v23 }
 0x237   :  { %v592_v20 = vrot.slane %v591_v21, 1  ;;  %v597_v3 = vrot.slane %v596_v5, 2  ;;  %v832_v59 = vrot.slane %v831_v40, 4  ;;  %v612_v37 = vadd.f32 %v611_v54, %v610_v12 }
 0x238   :  { %vm856_vm2 = vcmp.eq.s32.totalorder %v853_v25, 0  ;;  %vm859_vm3 = vcmp.eq.s32.totalorder %v855_v43, 1  ;;  %vm857_vm4 = vcmp.eq.s32.totalorder %v855_v43, 0 }
 0x239   :  { %v593_v34 = vadd.f32 %v592_v20, %v591_v21  ;;  %v598_v11 = vadd.f32 %v597_v3, %v596_v5  ;;  %v833_v47 = vadd.f32 %v832_v59, %v831_v40  ;;  %vm860_vm5 = vmand %vm856_vm2, %vm859_vm3 }
 0x23a   :  { %vm858_vm6 = vmand %vm856_vm2, %vm857_vm4 }
 0x23b   :  { %v834_v28 = vrot.slane %v833_v47, 2  ;;  %v599_v29 = vrot.slane %v598_v11, 1  ;;  %v613_v15 = vsel %vm601_vm1, %v593_v34, 0.0 }
 0x23c   :  { %v614_v49 = vadd.f32 %v613_v15, %v612_v37 }
 0x23d   :  { %v835_v32 = vadd.f32 %v834_v28, %v833_v47  ;;  %v600_v46 = vadd.f32 %v599_v29, %v598_v11 }
 0x23f   :  { %v615_v30 = vsel %vm601_vm1, %v600_v46, 0.0  ;;  %v836_v26 = vrot.slane %v835_v32, 1 }
 0x240   :  { %v616_v63 = vadd.f32 %v615_v30, %v614_v49 }
 0x241   :  { %v837_v52 = vadd.f32 %v836_v26, %v835_v32 }
 0x242   :  { %617 = vadd.xlane.f32.xlu0 %v616_v63 }
 0x243   :  { %v839_v13 = vsel %vm601_vm1, %v837_v52, 0.0 }
 0x244   :  { %v840_v24 = vadd.f32 %v839_v13, %v838_v19 }
 0x246   :  { %841 = vadd.xlane.f32.xlu1 %v840_v24 }
 0x2cb   :  { %v618_v41 = vpop.xlane.xlu0 %617 }
 0x2cc   :  { %v619_v17 = vrot.slane %v618_v41, 4 }
 0x2ce   :  { %v620_v18 = vadd.f32 %v619_v17, %v618_v41 }
 0x2cf   :  { %v842_v48 = vpop.xlane.xlu1 %841 }
 0x2d0   :  { %v621_v50 = vrot.slane %v620_v18, 2  ;;  %v843_v42 = vrot.slane %v842_v48, 4 }
 0x2d2   :  { %v844_v9 = vadd.f32 %v843_v42, %v842_v48  ;;  %v622_v7 = vadd.f32 %v621_v50, %v620_v18 }
 0x2d4   :  { %v845_v44 = vrot.slane %v844_v9, 2  ;;  %v623_v55 = vrot.slane %v622_v7, 1 }
 0x2d6   :  { %v846_v31 = vadd.f32 %v845_v44, %v844_v9  ;;  %v624_v57 = vadd.f32 %v623_v55, %v622_v7 }
 0x2d8   :  { %880 = vpush %v624_v57  ;;  %v847_v33 = vrot.slane %v846_v31, 1 }
 0x2da   :  { %v848_v53 = vadd.f32 %v847_v33, %v846_v31 }
 0x2dc   :  { %882 = vpush %v848_v53 }
 0x309   :  { %s881_s0 = spop %880 }
 0x30a   :  { %v626_v6 = vstv %s881_s0 }
 0x30d   :  { %s883_s22 = spop %882 }
 0x30e   :  { %v850_v27 = vstv %s883_s22 }
 0x30f   :  { %v861_v14 = vsel %vm860_vm5, %v850_v27, 0.0 }
 0x310   :  { %v862_v4 = vsel %vm858_vm6, %v626_v6, %v861_v14 }
 0x311   :  { %863 = vst [vmem:[#allocation7] sm:$0xff] %v862_v4 }
 0x312   :  { %996 = shalt.err (!%p993_p0)
}
 0x313   :  { %873 = dma.vmem_to_hbm [thread:$0]  %s871_s21, 128, %s1410_s2, [#allocation4]  }
 0x314   :  { %1009 = dma.done.wait [#allocation4], 128  }
 0x315   :  { %1010 = vsyncadd [#allocation4], 4294967168 }
 0x316   :  { %877 = vsyncpa [#allocation3], 1 }
 0x317   :  { %878 = vsyncpa [#allocation6], 1 }
 0x318   :  { %879 = vsyncpa [#allocation4], 1 }

</bundles_post_ra>
